<compile_context>
chip_gen: v7x
topology: tpu7x:2x2x1
jax: 0.10.0
libtpu: 0.0.40
codegen_flags: <defaults>
</compile_context>

<pallas_src>
import jax
import jax.numpy as jnp
from jax.experimental import pallas as pl
from jax.experimental.pallas import tpu as pltpu

LANE = 128


def _round_up(n, m):
    return ((n + m - 1) // m) * m


def qnetwork_kernel(x_ref, w1_ref, b1_ref, w2_ref, b2_ref, w3_ref, b3_ref, o_ref):
    """Fused 3-layer MLP: relu(x@W1+b1) -> relu(.@W2+b2) -> .@W3+b3.

    Hidden dims are pre-padded to multiples of 128 lanes (exact: padded hidden
    units get zero weight columns + zero bias, ReLU(0)=0). State and action
    dims are left un-padded. Dropout == identity (eval mode).
    """
    x = x_ref[...]

    # Hidden layer 1 + ReLU
    h1 = jnp.dot(x, w1_ref[...], preferred_element_type=jnp.float32) + b1_ref[...]
    h1 = jnp.maximum(h1, 0.0)
    # TODO(synk): training-mode dropout (p=0.25) would use pltpu.prng_seed +
    # pltpu.prng_random_bits with 1/(1-p) scaling; omitted for eval() parity.

    # Hidden layer 2 + ReLU
    h2 = jnp.dot(h1.astype(w2_ref.dtype), w2_ref[...],
                 preferred_element_type=jnp.float32) + b2_ref[...]
    h2 = jnp.maximum(h2, 0.0)

    # Output layer (no activation); last dim == action_size (masked narrow
    # store, trivially cheap and avoids padded writeback).
    out = jnp.dot(h2.astype(w3_ref.dtype), w3_ref[...],
                  preferred_element_type=jnp.float32) + b3_ref[...]
    o_ref[...] = out.astype(o_ref.dtype)


def prepare_params(params, *, compute_dtype=jnp.float32):
    """One-time packing of QNetwork params for the kernel.

    params: dict with w1 (S,H1), b1 (1,H1), w2 (H1,H2), b2 (1,H2), w3 (H2,A),
            b3 (1,A)  -- weights stored as (in, out), the transpose of
            PyTorch's nn.Linear (out, in) layout.

    Hidden dims are zero-padded to multiples of 128 lanes and weights are cast
    to compute_dtype here, so nothing param-related re-runs per forward call.
    """
    w1, b1 = params["w1"], params["b1"]
    w2, b2 = params["w2"], params["b2"]
    w3, b3 = params["w3"], params["b3"]

    S, H1 = w1.shape
    H2 = w2.shape[1]
    A = w3.shape[1]
    H1p, H2p = _round_up(H1, LANE), _round_up(H2, LANE)

    w1p = jnp.zeros((S, H1p), compute_dtype).at[:, :H1].set(w1.astype(compute_dtype))
    b1p = jnp.zeros((1, H1p), jnp.float32).at[:, :H1].set(b1.astype(jnp.float32))
    w2p = jnp.zeros((H1p, H2p), compute_dtype).at[:H1, :H2].set(w2.astype(compute_dtype))
    b2p = jnp.zeros((1, H2p), jnp.float32).at[:, :H2].set(b2.astype(jnp.float32))
    w3p = jnp.zeros((H2p, A), compute_dtype).at[:H2, :].set(w3.astype(compute_dtype))
    b3p = b3.astype(jnp.float32)

    return {
        "w1": w1p, "b1": b1p, "w2": w2p, "b2": b2p, "w3": w3p, "b3": b3p,
        "dims": (S, H1, H2, A),
        "compute_dtype": compute_dtype,
    }


def qnetwork_forward(x, prepared, *, batch_tile=2048):
    """Fused QNetwork forward. x: (B, state_size) -> (B, action_size) f32."""
    S, H1, H2, A = prepared["dims"]
    cd = prepared["compute_dtype"]
    w1p, b1p = prepared["w1"], prepared["b1"]
    w2p, b2p = prepared["w2"], prepared["b2"]
    w3p, b3p = prepared["w3"], prepared["b3"]
    H1p, H2p = w1p.shape[1], w2p.shape[1]

    B = x.shape[0]
    assert x.shape[1] == S, "state dim mismatch with prepared params"

    # Batch tile: 16-aligned (safe for bf16 sublane packing), capped by
    # batch_tile for very large eval batches. Grid = batch only.
    TB = min(batch_tile, _round_up(B, 16))
    Bp = _round_up(B, TB)

    xk = x.astype(cd)                      # no-op when cd == x.dtype (f32 path)
    if Bp != B:
        # single fused pad(+cast) of x; only hit when B isn't a tile multiple
        xk = jnp.zeros((Bp, S), cd).at[:B].set(xk)

    grid = (Bp // TB,)
    const = lambda shape: pl.BlockSpec(shape, lambda i: (0, 0))

    out = pl.pallas_call(
        qnetwork_kernel,
        out_shape=jax.ShapeDtypeStruct((Bp, A), jnp.float32),
        grid=grid,
        in_specs=[
            pl.BlockSpec((TB, S), lambda i: (i, 0)),    # x: streamed over batch
            const((S, H1p)), const((1, H1p)),           # W1, b1: VMEM-resident
            const((H1p, H2p)), const((1, H2p)),         # W2, b2
            const((H2p, A)), const((1, A)),             # W3, b3
        ],
        out_specs=pl.BlockSpec((TB, A), lambda i: (i, 0)),
        compiler_params=pltpu.CompilerParams(
            dimension_semantics=("parallel",)),          # shards batch on v7x when grid >= 2
    )(xk, w1p, b1p, w2p, b2p, w3p, b3p)

    return out if Bp == B else out[:B]


def init_qnetwork_params(key, state_size, action_size, layer_sizes=(64, 64)):
    """Deterministic init mimicking nn.Linear default (U[-1/sqrt(fan_in), +])."""
    sizes = [state_size, *layer_sizes, action_size]
    params = {}
    names = ["w1", "w2", "w3"]
    bnames = ["b1", "b2", "b3"]
    for i, (fan_in, fan_out) in enumerate(zip(sizes[:-1], sizes[1:])):
        key, kw, kb = jax.random.split(key, 3)
        bound = 1.0 / jnp.sqrt(jnp.float32(fan_in))
        # stored as (in, out): transpose of PyTorch's (out, in) weight matrix
        params[names[i]] = jax.random.uniform(
            kw, (fan_in, fan_out), jnp.float32, minval=-bound, maxval=bound
        )
        params[bnames[i]] = jax.random.uniform(
            kb, (1, fan_out), jnp.float32, minval=-bound, maxval=bound
        )
    return params


def _reference_forward(x, params):
    h = jnp.maximum(jnp.dot(x, params["w1"]) + params["b1"], 0.0)
    h = jnp.maximum(jnp.dot(h, params["w2"]) + params["b2"], 0.0)
    return jnp.dot(h, params["w3"]) + params["b3"]


if __name__ == "__main__":
    key = jax.random.PRNGKey(0)
    k_x, k_x2, k_p = jax.random.split(key, 3)

    batch = 64          # typical DQN replay minibatch
    state_size = 8
    action_size = 4
    layer_sizes = (64, 64)

    params = init_qnetwork_params(k_p, state_size, action_size, layer_sizes)
    prepared = prepare_params(params)     # one-time pad + cast (f32 parity path)

    # --- replay-minibatch case (B is a tile multiple: no padding anywhere) ---
    x = jax.random.normal(k_x, (batch, state_size), dtype=jnp.float32)
    q_values = qnetwork_forward(x, prepared)
    q_values = jax.block_until_ready(q_values)
    assert q_values.shape == (batch, action_size)
    ref = _reference_forward(x, params)
    assert jnp.allclose(q_values, ref, atol=2e-2, rtol=2e-2), "mismatch vs reference"

    # --- odd-batch case (exercises the batch-padding path, e.g. act()) ---
    x2 = jax.random.normal(k_x2, (5, state_size), dtype=jnp.float32)
    q2 = jax.block_until_ready(qnetwork_forward(x2, prepared))
    assert q2.shape == (5, action_size)
    ref2 = _reference_forward(x2, params)
    assert jnp.allclose(q2, ref2, atol=2e-2, rtol=2e-2), "mismatch vs reference (odd batch)"

    print("KERNEL_OK")
</pallas_src>

<mosaic_0001>
module attributes {stable_mosaic.version = 11 : i64} {
  func.func @qnetwork_kernel(%arg0: i32, %arg1: memref<64x8xf32, #tpu.memory_space<vmem>>, %arg2: memref<8x128xf32, #tpu.memory_space<vmem>>, %arg3: memref<1x128xf32, #tpu.memory_space<vmem>>, %arg4: memref<128x128xf32, #tpu.memory_space<vmem>>, %arg5: memref<1x128xf32, #tpu.memory_space<vmem>>, %arg6: memref<128x4xf32, #tpu.memory_space<vmem>>, %arg7: memref<1x4xf32, #tpu.memory_space<vmem>>, %arg8: memref<64x4xf32, #tpu.memory_space<vmem>>) attributes {dimension_semantics = [#tpu.dimension_semantics<parallel>], iteration_bounds = array<i64: 1>, scalar_prefetch = 0 : i64, scratch_operands = 0 : i64, tpu.core_type = #tpu.core_type<tc>, window_params = [{transform_indices = @transform_0, window_bounds = array<i64: 64, 8>}, {pipeline_mode = #tpu.pipeline_mode<synchronous>, transform_indices = @transform_1, window_bounds = array<i64: 8, 128>}, {pipeline_mode = #tpu.pipeline_mode<synchronous>, transform_indices = @transform_2, window_bounds = array<i64: 1, 128>}, {pipeline_mode = #tpu.pipeline_mode<synchronous>, transform_indices = @transform_3, window_bounds = array<i64: 128, 128>}, {pipeline_mode = #tpu.pipeline_mode<synchronous>, transform_indices = @transform_4, window_bounds = array<i64: 1, 128>}, {pipeline_mode = #tpu.pipeline_mode<synchronous>, transform_indices = @transform_5, window_bounds = array<i64: 128, 4>}, {pipeline_mode = #tpu.pipeline_mode<synchronous>, transform_indices = @transform_6, window_bounds = array<i64: 1, 4>}, {transform_indices = @transform_7, window_bounds = array<i64: 64, 4>}]} {
    %c0 = arith.constant 0 : index
    %c0_0 = arith.constant 0 : index
    %0 = vector.load %arg1[%c0, %c0_0] : memref<64x8xf32, #tpu.memory_space<vmem>>, vector<64x8xf32>
    %c0_1 = arith.constant 0 : index
    %c0_2 = arith.constant 0 : index
    %1 = vector.load %arg2[%c0_1, %c0_2] : memref<8x128xf32, #tpu.memory_space<vmem>>, vector<8x128xf32>
    %cst = arith.constant dense<0.000000e+00> : vector<64x128xf32>
    %2 = tpu.matmul %0, %1, %cst {dimension_numbers = #tpu.dot_dimension_numbers<[1], [0], [0], [1], [0, 0, 1, 1], [], []>} : vector<64x8xf32>, vector<8x128xf32>, vector<64x128xf32> -> vector<64x128xf32>
    %c0_3 = arith.constant 0 : index
    %c0_4 = arith.constant 0 : index
    %3 = vector.load %arg3[%c0_3, %c0_4] : memref<1x128xf32, #tpu.memory_space<vmem>>, vector<1x128xf32>
    %4 = vector.broadcast %3 : vector<1x128xf32> to vector<64x128xf32>
    %5 = arith.addf %2, %4 : vector<64x128xf32>
    %cst_5 = arith.constant 0.000000e+00 : f32
    %6 = vector.broadcast %cst_5 : f32 to vector<64x128xf32>
    %7 = arith.maximumf %5, %6 : vector<64x128xf32>
    %c0_6 = arith.constant 0 : index
    %c0_7 = arith.constant 0 : index
    %8 = vector.load %arg4[%c0_6, %c0_7] : memref<128x128xf32, #tpu.memory_space<vmem>>, vector<128x128xf32>
    %cst_8 = arith.constant dense<0.000000e+00> : vector<64x128xf32>
    %9 = tpu.matmul %7, %8, %cst_8 {dimension_numbers = #tpu.dot_dimension_numbers<[1], [0], [0], [1], [0, 0, 1, 1], [], []>} : vector<64x128xf32>, vector<128x128xf32>, vector<64x128xf32> -> vector<64x128xf32>
    %c0_9 = arith.constant 0 : index
    %c0_10 = arith.constant 0 : index
    %10 = vector.load %arg5[%c0_9, %c0_10] : memref<1x128xf32, #tpu.memory_space<vmem>>, vector<1x128xf32>
    %11 = vector.broadcast %10 : vector<1x128xf32> to vector<64x128xf32>
    %12 = arith.addf %9, %11 : vector<64x128xf32>
    %cst_11 = arith.constant 0.000000e+00 : f32
    %13 = vector.broadcast %cst_11 : f32 to vector<64x128xf32>
    %14 = arith.maximumf %12, %13 : vector<64x128xf32>
    %c0_12 = arith.constant 0 : index
    %c0_13 = arith.constant 0 : index
    %15 = vector.load %arg6[%c0_12, %c0_13] : memref<128x4xf32, #tpu.memory_space<vmem>>, vector<128x4xf32>
    %cst_14 = arith.constant dense<0.000000e+00> : vector<64x4xf32>
    %16 = tpu.matmul %14, %15, %cst_14 {dimension_numbers = #tpu.dot_dimension_numbers<[1], [0], [0], [1], [0, 0, 1, 1], [], []>} : vector<64x128xf32>, vector<128x4xf32>, vector<64x4xf32> -> vector<64x4xf32>
    %c0_15 = arith.constant 0 : index
    %c0_16 = arith.constant 0 : index
    %17 = vector.load %arg7[%c0_15, %c0_16] : memref<1x4xf32, #tpu.memory_space<vmem>>, vector<1x4xf32>
    %18 = vector.broadcast %17 : vector<1x4xf32> to vector<64x4xf32>
    %19 = arith.addf %16, %18 : vector<64x4xf32>
    %c0_17 = arith.constant 0 : index
    %c0_18 = arith.constant 0 : index
    %20 = vector.load %arg8[%c0_17, %c0_18] : memref<64x4xf32, #tpu.memory_space<vmem>>, vector<64x4xf32>
    tpu.vector_store %arg8[%c0_17, %c0_18], %19 {strides = array<i32>} : memref<64x4xf32, #tpu.memory_space<vmem>>, vector<64x4xf32>,
    return
  }
  func.func @transform_0(%arg0: i32) -> (i32, i32) {
    %c0_i32 = arith.constant 0 : i32
    %c0_i32_0 = arith.constant 0 : i32
    return %arg0, %c0_i32 : i32, i32
  }
  func.func @transform_1(%arg0: i32) -> (i32, i32) {
    %c0_i32 = arith.constant 0 : i32
    %c0_i32_0 = arith.constant 0 : i32
    %c0_i32_1 = arith.constant 0 : i32
    return %c0_i32, %c0_i32_0 : i32, i32
  }
  func.func @transform_2(%arg0: i32) -> (i32, i32) {
    %c0_i32 = arith.constant 0 : i32
    %c0_i32_0 = arith.constant 0 : i32
    %c0_i32_1 = arith.constant 0 : i32
    return %c0_i32, %c0_i32_0 : i32, i32
  }
  func.func @transform_3(%arg0: i32) -> (i32, i32) {
    %c0_i32 = arith.constant 0 : i32
    %c0_i32_0 = arith.constant 0 : i32
    %c0_i32_1 = arith.constant 0 : i32
    return %c0_i32, %c0_i32_0 : i32, i32
  }
  func.func @transform_4(%arg0: i32) -> (i32, i32) {
    %c0_i32 = arith.constant 0 : i32
    %c0_i32_0 = arith.constant 0 : i32
    %c0_i32_1 = arith.constant 0 : i32
    return %c0_i32, %c0_i32_0 : i32, i32
  }
  func.func @transform_5(%arg0: i32) -> (i32, i32) {
    %c0_i32 = arith.constant 0 : i32
    %c0_i32_0 = arith.constant 0 : i32
    %c0_i32_1 = arith.constant 0 : i32
    return %c0_i32, %c0_i32_0 : i32, i32
  }
  func.func @transform_6(%arg0: i32) -> (i32, i32) {
    %c0_i32 = arith.constant 0 : i32
    %c0_i32_0 = arith.constant 0 : i32
    %c0_i32_1 = arith.constant 0 : i32
    return %c0_i32, %c0_i32_0 : i32, i32
  }
  func.func @transform_7(%arg0: i32) -> (i32, i32) {
    %c0_i32 = arith.constant 0 : i32
    %c0_i32_0 = arith.constant 0 : i32
    return %arg0, %c0_i32 : i32, i32
  }
}

</mosaic_0001>

<bundles_post_ra>
// kernel: tpu_custom_call.1
= control target key start
LH: loop header
LB: loop body
LE: loop exit
PB: predicated region body
PF: predicated region fallthrough
CT: control target
= control target key end

     0   :  { %vm42_vm0 = vcmask 64512   ;;  %vm444_vm1 = vcmask 31744   ;;  %s903_s1 = inlined_call_operand.vmem [shape: f32[8,128], index: 1, kind: input, shape index: {}]   ;;  %s904_s0 = inlined_call_operand.vmem [shape: f32[64,8], index: 0, kind: input, shape index: {}]   ;;  %s905_s3 = inlined_call_operand.vmem [shape: f32[128,128], index: 3, kind: input, shape index: {}]   ;;  %s906_s5 = inlined_call_operand.vmem [shape: f32[128,4], index: 5, kind: input, shape index: {}]   ;;  %s907_s2 = inlined_call_operand.vmem [shape: f32[1,128], index: 2, kind: input, shape index: {}]   ;;  %s908_s4 = inlined_call_operand.vmem [shape: f32[1,128], index: 4, kind: input, shape index: {}]   ;;  %s909_s6 = inlined_call_operand.vmem [shape: f32[1,4], index: 6, kind: input, shape index: {}]   ;;  %s910_s7 = inlined_call_operand.vmem [shape: f32[64,4], index: 7, kind: output, shape index: {}]  }
   0x1   :  { %v34_v0 = vld [vmem:[%s903_s1] sm:$0xff]  ;;  %v27_v2 = vld [vmem:[%s904_s0 + $0x8] sm:$0xff]  ;;  %v28_v3 = vld [vmem:[%s904_s0 + $0x10] sm:$0xff] }
   0x2   :  { %v26_v1 = vld [vmem:[%s904_s0] sm:$0xff]  ;;  %525 = vmatprep.subr.mxu0 %v34_v0  ;;  %v181_v5 = vld [vmem:[%s905_s3 + $0x8] sm:$0xff]  ;;  %v182_v6 = vld [vmem:[%s905_s3 + $0x10] sm:$0xff] }
   0x3   :  { %527 = vmatprep.mubr.msk.f32.mxu0 %vm42_vm0, %v26_v1  ;;  %526 = vmatpush3.msra.mxu0 %v34_v0  ;;  %v180_v4 = vld [vmem:[%s905_s3] sm:$0xff]  ;;  %v29_v7 = vld [vmem:[%s904_s0 + $0x18] sm:$0xff]  ;;  %v185_v13 = vld [vmem:[%s905_s3 + $0x28] sm:$0xff] }
   0x4   :  { %528 = vmatmul.mubr.msk.f32.vlgmr.msra.gmra.mrb[0].mxu0 %vm42_vm0, %v27_v2  ;;  %v627_v8 = vpack.c.bf16 %v181_v5, %v180_v4  ;;  %v183_v9 = vld [vmem:[%s905_s3 + $0x18] sm:$0xff]  ;;  %v30_v10 = vld [vmem:[%s904_s0 + $0x20] sm:$0xff]  ;;  %v31_v14 = vld [vmem:[%s904_s0 + $0x28] sm:$0xff] }
   0x5   :  { %530 = vmatprep.mubr.msk.f32.mxu0 %vm42_vm0, %v28_v3  ;;  %v631_v11 = vpack.c.bf16 %v183_v9, %v182_v6  ;;  %v184_v12 = vld [vmem:[%s905_s3 + $0x20] sm:$0xff]  ;;  %v32_v16 = vld [vmem:[%s904_s0 + $0x30] sm:$0xff]  ;;  %v187_v18 = vld [vmem:[%s905_s3 + $0x38] sm:$0xff] }
   0x6   :  { %628 = vmatprep.subr.bf16.mxu1 %v627_v8  ;;  %v635_v15 = vpack.c.bf16 %v185_v13, %v184_v12  ;;  %v186_v17 = vld [vmem:[%s905_s3 + $0x30] sm:$0xff]  ;;  %v33_v19 = vld [vmem:[%s904_s0 + $0x38] sm:$0xff]  ;;  %v188_v21 = vld [vmem:[%s905_s3 + $0x40] sm:$0xff] }
   0x7   :  { %630 = vmatpush3.bf16.msra.mxu1 %v627_v8  ;;  %v639_v20 = vpack.c.bf16 %v187_v18, %v186_v17  ;;  %v189_v22 = vld [vmem:[%s905_s3 + $0x48] sm:$0xff]  ;;  %v190_v24 = vld [vmem:[%s905_s3 + $0x50] sm:$0xff]  ;;  %v191_v25 = vld [vmem:[%s905_s3 + $0x58] sm:$0xff] }
   0x8   :  { %531 = vmatmul.mubr.msk.f32.gmra.mrb[2].mxu0 %vm42_vm0, %v29_v7  ;;  %632 = vmatprep.subr.bf16.mxu1 %v631_v11  ;;  %v643_v23 = vpack.c.bf16 %v189_v22, %v188_v21  ;;  %v647_v26 = vpack.c.bf16 %v191_v25, %v190_v24  ;;  %v192_v27 = vld [vmem:[%s905_s3 + $0x60] sm:$0xff]  ;;  %v193_v28 = vld [vmem:[%s905_s3 + $0x68] sm:$0xff]  ;;  %v194_v30 = vld [vmem:[%s905_s3 + $0x70] sm:$0xff] }
   0x9   :  { %533 = vmatprep.mubr.msk.f32.mxu0 %vm42_vm0, %v30_v10  ;;  %v651_v29 = vpack.c.bf16 %v193_v28, %v192_v27  ;;  %v195_v31 = vld [vmem:[%s905_s3 + $0x78] sm:$0xff]  ;;  %v316_v33 = vld [vmem:[%s906_s5] sm:$0xff]  ;;  %v317_v34 = vld [vmem:[%s906_s5 + $0x8] sm:$0xff] }
   0xa   :  { %v655_v32 = vpack.c.bf16 %v195_v31, %v194_v30  ;;  %v318_v35 = vld [vmem:[%s906_s5 + $0x10] sm:$0xff]  ;;  %v659_v36 = vpack.c.bf16 %v317_v34, %v316_v33  ;;  %v319_v37 = vld [vmem:[%s906_s5 + $0x18] sm:$0xff]  ;;  %v320_v39 = vld [vmem:[%s906_s5 + $0x20] sm:$0xff] }
   0xb   :  { %634 = vmatpush3.bf16.msra.mxu1 %v631_v11  ;;  %v663_v38 = vpack.c.bf16 %v319_v37, %v318_v35  ;;  %v321_v40 = vld [vmem:[%s906_s5 + $0x28] sm:$0xff]  ;;  %v322_v42 = vld [vmem:[%s906_s5 + $0x30] sm:$0xff]  ;;  %v323_v43 = vld [vmem:[%s906_s5 + $0x38] sm:$0xff] }
   0xc   :  { %534 = vmatmul.mubr.msk.f32.gmra.mrb[4].mxu0 %vm42_vm0, %v31_v14  ;;  %636 = vmatprep.subr.bf16.mxu1 %v635_v15  ;;  %v667_v41 = vpack.c.bf16 %v321_v40, %v320_v39  ;;  %v671_v44 = vpack.c.bf16 %v323_v43, %v322_v42  ;;  %v324_v45 = vld [vmem:[%s906_s5 + $0x40] sm:$0xff]  ;;  %v325_v46 = vld [vmem:[%s906_s5 + $0x48] sm:$0xff]  ;;  %v326_v48 = vld [vmem:[%s906_s5 + $0x50] sm:$0xff] }
   0xd   :  { %536 = vmatprep.mubr.msk.f32.mxu0 %vm42_vm0, %v32_v16  ;;  %660 = vmatprep.subr.bf16.mxu0 %v659_v36  ;;  %v675_v47 = vpack.c.bf16 %v325_v46, %v324_v45  ;;  %v327_v49 = vld [vmem:[%s906_s5 + $0x58] sm:$0xff]  ;;  %v328_v51 = vld [vmem:[%s906_s5 + $0x60] sm:$0xff]  ;;  %v329_v52 = vld [vmem:[%s906_s5 + $0x68] sm:$0xff] }
   0xe   :  { %662 = vmatpush3.bf16.msra.mxu0 %v659_v36  ;;  %v679_v50 = vpack.c.bf16 %v327_v49, %v326_v48  ;;  %v683_v53 = vpack.c.bf16 %v329_v52, %v328_v51  ;;  %v457_v54 = vld [vmem:[%s907_s2] ss:$0 sm:$0xff]  ;;  %v331_v16 = vld [vmem:[%s906_s5 + $0x78] sm:$0xff] }
   0xf   :  { %638 = vmatpush3.bf16.msra.mxu1 %v635_v15  ;;  %664 = vmatprep.subr.bf16.mxu0 %v663_v38  ;;  %v330_v15 = vld [vmem:[%s906_s5 + $0x70] sm:$0xff]  ;;  %v466_v18 = vld [vmem:[%s908_s4] ss:$0 sm:$0xff] }
  0x10   :  { %537 = vmatmul.mubr.msk.f32.gmra.mrb[6].mxu0 %vm42_vm0, %v33_v19  ;;  %640 = vmatprep.subr.bf16.mxu1 %v639_v20  ;;  %v687_v17 = vpack.c.bf16 %v331_v16, %v330_v15  ;;  %v467_v43 = vld [vmem:[%s909_s6] ss:$0 sm:$0xff] }
  0x12   :  { %666 = vmatpush3.bf16.msra.mxu0 %v663_v38 }
  0x13   :  { %642 = vmatpush3.bf16.msra.mxu1 %v639_v20  ;;  %668 = vmatprep.subr.bf16.mxu0 %v667_v41 }
  0x14   :  { %644 = vmatprep.subr.bf16.mxu1 %v643_v23 }
  0x16   :  { %670 = vmatpush3.bf16.msra.mxu0 %v667_v41 }
  0x17   :  { %646 = vmatpush3.bf16.msra.mxu1 %v643_v23  ;;  %672 = vmatprep.subr.bf16.mxu0 %v671_v44 }
  0x18   :  { %648 = vmatprep.subr.bf16.mxu1 %v647_v26 }
  0x1a   :  { %674 = vmatpush3.bf16.msra.mxu0 %v671_v44 }
  0x1b   :  { %650 = vmatpush3.bf16.msra.mxu1 %v647_v26  ;;  %676 = vmatprep.subr.bf16.mxu0 %v675_v47 }
  0x1c   :  { %652 = vmatprep.subr.bf16.mxu1 %v651_v29 }
  0x1e   :  { %678 = vmatpush3.bf16.msra.mxu0 %v675_v47 }
  0x1f   :  { %654 = vmatpush3.bf16.msra.mxu1 %v651_v29  ;;  %680 = vmatprep.subr.bf16.mxu0 %v679_v50 }
  0x20   :  { %656 = vmatprep.subr.bf16.mxu1 %v655_v32 }
  0x22   :  { %682 = vmatpush3.bf16.msra.mxu0 %v679_v50 }
  0x23   :  { %658 = vmatpush3.bf16.msra.mxu1 %v655_v32  ;;  %684 = vmatprep.subr.bf16.mxu0 %v683_v53 }
  0x26   :  { %686 = vmatpush3.bf16.msra.mxu0 %v683_v53 }
  0x27   :  { %688 = vmatprep.subr.bf16.mxu0 %v687_v17 }
  0x2a   :  { %690 = vmatpush3.bf16.msra.mxu0 %v687_v17 }
  0xd7   :  { %v529_v55 = vpop.f32.mrb[0].mxu0 }
  0xd8   :  { %v139_v56 = vadd.f32 %v529_v55, %v457_v54  ;;  %v133_v57 = vpop.f32.mrb[1].mxu0 }
  0xd9   :  { %v134_v58 = vadd.f32 %v457_v54, %v133_v57 }
  0xda   :  { %v173_v61 = vmax.f32 %v139_v56, 0.0 }
  0xdb   :  { %v532_v59 = vpop.f32.mrb[2].mxu0  ;;  %v172_v60 = vmax.f32 %v134_v58, 0.0 }
  0xdc   :  { %v149_v62 = vadd.f32 %v532_v59, %v457_v54  ;;  %v143_v63 = vpop.f32.mrb[3].mxu0 }
  0xdd   :  { %v144_v0 = vadd.f32 %v457_v54, %v143_v63  ;;  %571 = vmatprep.mubr.f32.mxu1 %v172_v60 }
  0xde   :  { %572 = vmatmul.mubr.f32.vlgmr.msra.gmra.mrb[0].mxu1 %v173_v61  ;;  %v175_v3 = vmax.f32 %v149_v62, 0.0 }
  0xdf   :  { %v174_v1 = vmax.f32 %v144_v0, 0.0  ;;  %v535_v2 = vpop.f32.mrb[4].mxu0 }
  0xe0   :  { %v159_v4 = vadd.f32 %v535_v2, %v457_v54  ;;  %v153_v5 = vpop.f32.mrb[5].mxu0 }
  0xe1   :  { %v154_v6 = vadd.f32 %v457_v54, %v153_v5  ;;  %574 = vmatprep.mubr.f32.mxu1 %v174_v1 }
  0xe2   :  { %575 = vmatmul.mubr.f32.gmra.mrb[2].mxu1 %v175_v3  ;;  %v177_v9 = vmax.f32 %v159_v4, 0.0 }
  0xe3   :  { %v176_v7 = vmax.f32 %v154_v6, 0.0  ;;  %v538_v8 = vpop.f32.mrb[6].mxu0 }
  0xe4   :  { %v169_v10 = vadd.f32 %v538_v8, %v457_v54  ;;  %v163_v11 = vpop.f32.mrb[7].mxu0 }
  0xe5   :  { %v164_v12 = vadd.f32 %v457_v54, %v163_v11  ;;  %577 = vmatprep.mubr.f32.mxu1 %v176_v7 }
  0xe6   :  { %578 = vmatmul.mubr.f32.gmra.mrb[4].mxu1 %v177_v9  ;;  %v179_v14 = vmax.f32 %v169_v10, 0.0 }
  0xe7   :  { %v178_v13 = vmax.f32 %v164_v12, 0.0 }
  0xe9   :  { %580 = vmatprep.mubr.f32.mxu1 %v178_v13 }
  0xea   :  { %581 = vmatmul.mubr.f32.gmra.mrb[6].mxu1 %v179_v14 }
 0x1b1   :  { %v573_v19 = vpop.f32.mrb[0].mxu1 }
 0x1b2   :  { %v275_v20 = vadd.f32 %v573_v19, %v466_v18  ;;  %v269_v21 = vpop.f32.mrb[1].mxu1 }
 0x1b3   :  { %v270_v22 = vadd.f32 %v466_v18, %v269_v21 }
 0x1b4   :  { %v309_v25 = vmax.f32 %v275_v20, 0.0 }
 0x1b5   :  { %v308_v23 = vmax.f32 %v270_v22, 0.0  ;;  %v576_v24 = vpop.f32.mrb[2].mxu1 }
 0x1b6   :  { %v285_v26 = vadd.f32 %v576_v24, %v466_v18  ;;  %v279_v27 = vpop.f32.mrb[3].mxu1 }
 0x1b7   :  { %v280_v28 = vadd.f32 %v466_v18, %v279_v27  ;;  %615 = vmatprep.mubr.f32.mxu0 %v308_v23 }
 0x1b8   :  { %616 = vmatmul.mubr.f32.vlgmr.msra.gmra.mrb[8].mxu0 %v309_v25  ;;  %v311_v31 = vmax.f32 %v285_v26, 0.0 }
 0x1b9   :  { %v310_v29 = vmax.f32 %v280_v28, 0.0  ;;  %v579_v30 = vpop.f32.mrb[4].mxu1 }
 0x1ba   :  { %v295_v32 = vadd.f32 %v579_v30, %v466_v18  ;;  %v289_v33 = vpop.f32.mrb[5].mxu1 }
 0x1bb   :  { %v290_v34 = vadd.f32 %v466_v18, %v289_v33  ;;  %618 = vmatprep.mubr.f32.mxu0 %v310_v29 }
 0x1bc   :  { %619 = vmatmul.mubr.f32.gmra.mrb[10].mxu0 %v311_v31  ;;  %v313_v37 = vmax.f32 %v295_v32, 0.0 }
 0x1bd   :  { %v312_v35 = vmax.f32 %v290_v34, 0.0  ;;  %v582_v36 = vpop.f32.mrb[6].mxu1 }
 0x1be   :  { %v305_v38 = vadd.f32 %v582_v36, %v466_v18  ;;  %v299_v39 = vpop.f32.mrb[7].mxu1 }
 0x1bf   :  { %v300_v40 = vadd.f32 %v466_v18, %v299_v39  ;;  %621 = vmatprep.mubr.f32.mxu0 %v312_v35 }
 0x1c0   :  { %622 = vmatmul.mubr.f32.gmra.mrb[12].mxu0 %v313_v37  ;;  %v315_v42 = vmax.f32 %v305_v38, 0.0 }
 0x1c1   :  { %v314_v41 = vmax.f32 %v300_v40, 0.0 }
 0x1c3   :  { %624 = vmatprep.mubr.f32.mxu0 %v314_v41 }
 0x1c4   :  { %625 = vmatmul.mubr.f32.gmra.mrb[14].mxu0 %v315_v42 }
 0x28b   :  { %v617_v44 = vpop.f32.mrb[8].mxu0 }
 0x28c   :  { %v411_v45 = vadd.f32 %v617_v44, %v467_v43  ;;  %v405_v46 = vpop.f32.mrb[9].mxu0 }
 0x28d   :  { %v406_v47 = vadd.f32 %v467_v43, %v405_v46 }
 0x28e   :  { %446 = vst.msk [vmem:[%s910_s7 + $0x8] sm:$0xff] %vm444_vm1, %v411_v45 }
 0x28f   :  { %445 = vst.msk [vmem:[%s910_s7] sm:$0xff] %vm444_vm1, %v406_v47  ;;  %v620_v48 = vpop.f32.mrb[10].mxu0 }
 0x290   :  { %v421_v49 = vadd.f32 %v620_v48, %v467_v43  ;;  %v415_v50 = vpop.f32.mrb[11].mxu0 }
 0x291   :  { %v416_v51 = vadd.f32 %v467_v43, %v415_v50 }
 0x292   :  { %448 = vst.msk [vmem:[%s910_s7 + $0x18] sm:$0xff] %vm444_vm1, %v421_v49 }
 0x293   :  { %447 = vst.msk [vmem:[%s910_s7 + $0x10] sm:$0xff] %vm444_vm1, %v416_v51  ;;  %v623_v52 = vpop.f32.mrb[12].mxu0 }
 0x294   :  { %v431_v53 = vadd.f32 %v623_v52, %v467_v43  ;;  %v425_v54 = vpop.f32.mrb[13].mxu0 }
 0x295   :  { %v426_v55 = vadd.f32 %v467_v43, %v425_v54 }
 0x296   :  { %450 = vst.msk [vmem:[%s910_s7 + $0x28] sm:$0xff] %vm444_vm1, %v431_v53 }
 0x297   :  { %449 = vst.msk [vmem:[%s910_s7 + $0x20] sm:$0xff] %vm444_vm1, %v426_v55  ;;  %v626_v56 = vpop.f32.mrb[14].mxu0 }
 0x298   :  { %v441_v57 = vadd.f32 %v626_v56, %v467_v43  ;;  %v435_v58 = vpop.f32.mrb[15].mxu0 }
 0x299   :  { %v436_v59 = vadd.f32 %v467_v43, %v435_v58 }
 0x29a   :  { %452 = vst.msk [vmem:[%s910_s7 + $0x38] sm:$0xff] %vm444_vm1, %v441_v57 }
 0x29b   :  { %451 = vst.msk [vmem:[%s910_s7 + $0x30] sm:$0xff] %vm444_vm1, %v436_v59 }

</bundles_post_ra>
